<compile_context>
chip_gen: v6e
topology: v6e:2x2x1
jax: 0.10.0
libtpu: 0.0.40
codegen_flags: <defaults>
</compile_context>

<pallas_src>
import jax
import jax.numpy as jnp
from jax.experimental import pallas as pl
from jax.experimental.pallas import tpu as pltpu

_LANES = 128
_SUBLANES = 8
_BLOCK_ROWS = 2048  # (2048, 128) f32 = 1 MiB per block


def _sigmoid_kernel(x_ref, o_ref):
    # Compute in f32 (exact exp on the EUP), store in the output dtype.
    x = x_ref[...].astype(jnp.float32)
    o_ref[...] = jax.nn.sigmoid(x).astype(o_ref.dtype)


@jax.jit
def sigmoid_pallas(x):
    """Elementwise sigmoid via Pallas. Returns same shape/dtype as input."""
    orig_shape = x.shape
    total = x.size

    # Pack into a lane+sublane-dense (rows, 128) slab. Pad the tail to a
    # multiple of 8*128 so every vreg is fully occupied and all stores are
    # unmasked; sigmoid of the pad is harmless and is sliced away below.
    padded = pl.cdiv(total, _SUBLANES * _LANES) * (_SUBLANES * _LANES)
    flat = x.reshape(total)
    if padded != total:
        flat = jnp.pad(flat, (0, padded - total))
    rows = padded // _LANES
    x2d = flat.reshape(rows, _LANES)

    if rows <= _BLOCK_ROWS:
        # Tiny/medium case (the module's [1,768,1,1] lands here as (8,128)):
        # single full-array VMEM block, no grid-step overhead.
        out2d = pl.pallas_call(
            _sigmoid_kernel,
            out_shape=jax.ShapeDtypeStruct(x2d.shape, x2d.dtype),
            in_specs=[pl.BlockSpec(memory_space=pltpu.MemorySpace.VMEM)],
            out_specs=pl.BlockSpec(memory_space=pltpu.MemorySpace.VMEM),
            input_output_aliases={0: 0},
        )(x2d)
    else:
        # Large activations: auto-pipelined lane-dense tiles sized near the
        # HBM roofline; "parallel" lets the v7x megacore split the rows.
        grid = (pl.cdiv(rows, _BLOCK_ROWS),)
        out2d = pl.pallas_call(
            _sigmoid_kernel,
            out_shape=jax.ShapeDtypeStruct(x2d.shape, x2d.dtype),
            grid=grid,
            in_specs=[pl.BlockSpec((_BLOCK_ROWS, _LANES), lambda i: (i, 0))],
            out_specs=pl.BlockSpec((_BLOCK_ROWS, _LANES), lambda i: (i, 0)),
            input_output_aliases={0: 0},
            compiler_params=pltpu.CompilerParams(
                dimension_semantics=("parallel",),
                vmem_limit_bytes=32 * 1024 * 1024,
            ),
        )(x2d)

    out_flat = out2d.reshape(padded)
    if padded != total:
        out_flat = out_flat[:total]
    return out_flat.reshape(orig_shape)


if __name__ == "__main__":
    key = jax.random.PRNGKey(0)
    # Same shape as the PyTorch module's input: [1, 768, 1, 1]
    x = jax.random.normal(key, (1, 768, 1, 1), dtype=jnp.float32)

    y = sigmoid_pallas(x)
    jax.block_until_ready(y)

    # Correctness check against plain JAX sigmoid.
    y_ref = jax.nn.sigmoid(x)
    assert y.shape == x.shape and y.dtype == x.dtype
    assert jnp.allclose(y, y_ref, atol=1e-6, rtol=1e-6)

    print("KERNEL_OK")
</pallas_src>

<mosaic_0001>
module attributes {stable_mosaic.version = 11 : i64} {
  func.func @_sigmoid_kernel(%arg0: memref<8x128xf32, #tpu.memory_space<vmem>>, %arg1: memref<8x128xf32, #tpu.memory_space<vmem>>) attributes {dimension_semantics = [], scalar_prefetch = 0 : i64, scratch_operands = 0 : i64, tpu.core_type = #tpu.core_type<tc>} {
    %c0 = arith.constant 0 : index
    %c0_0 = arith.constant 0 : index
    %0 = vector.load %arg0[%c0, %c0_0] : memref<8x128xf32, #tpu.memory_space<vmem>>, vector<8x128xf32>
    %1 = arith.negf %0 : vector<8x128xf32>
    %2 = math.exp %1 : vector<8x128xf32>
    %cst = arith.constant 1.000000e+00 : f32
    %3 = vector.broadcast %cst : f32 to vector<8x128xf32>
    %4 = arith.addf %3, %2 : vector<8x128xf32>
    %5 = arith.divf %3, %4 : vector<8x128xf32>
    %c0_1 = arith.constant 0 : index
    %c0_2 = arith.constant 0 : index
    %6 = vector.load %arg1[%c0_1, %c0_2] : memref<8x128xf32, #tpu.memory_space<vmem>>, vector<8x128xf32>
    tpu.vector_store %arg1[%c0_1, %c0_2], %5 {strides = array<i32>} : memref<8x128xf32, #tpu.memory_space<vmem>>, vector<8x128xf32>,
    return
  }
}

</mosaic_0001>

<bundles_post_ra>
// kernel: sigmoid_pallas.1
= control target key start
LH: loop header
LB: loop body
LE: loop exit
PB: predicated region body
PF: predicated region fallthrough
CT: control target
= control target key end

     0   :  { %s41_s0 = inlined_call_operand.vmem [shape: f32[8,128], index: 0, kind: input, shape index: {}, may-alias: {0,1}]   ;;  %s42_s1 = inlined_call_operand.vmem [shape: f32[8,128], index: 1, kind: output, shape index: {}, may-alias: {0,1}]  }
   0x1   :  { %v8_v0 = vld [vmem:[%s41_s0] sm:$0xff] }
   0x2   :  { %v20_v1 = vmul.f32 -1.442695, %v8_v0 }
   0x4   :  { %21 = vpow2.f32 %v20_v1 }
  0x11   :  { %v22_v2 = vpop.eup %21 }
  0x12   :  { %v12_v3 = vadd.f32 1.0, %v22_v2 }
  0x14   :  { %23 = vrcp.f32 %v12_v3 }
  0x21   :  { %v24_v4 = vpop.eup %23 }
  0x22   :  { %15 = vst [vmem:[%s42_s1] sm:$0xff] %v24_v4 }

</bundles_post_ra>
